<compile_context>
chip_gen: v5e
topology: v5e:2x2
jax: 0.10.0
libtpu: 0.0.40
codegen_flags: <defaults>
</compile_context>

<pallas_src>
import functools

import jax
import jax.numpy as jnp
from jax.experimental import pallas as pl
from jax.experimental.pallas import tpu as pltpu

IN_DIM = 64
HID_DIM = 128
OUT_DIM = 128

# Below this many rows, forcing >=2 grid steps (for v7x's 2nd TensorCore) costs
# more in per-step overhead than it gains; use a single exact block instead.
_SPLIT_MIN_ROWS = 4096


def _round_up(n, m):
    return ((n + m - 1) // m) * m


def _fused_linear_kernel(x_ref, w_ref, b_ref, o_ref):
    # x_ref: (tm, 64), w_ref: (64, 128), b_ref: (1, 128) f32, o_ref: (tm, 128)
    z = jnp.dot(x_ref[...], w_ref[...], preferred_element_type=jnp.float32)
    o_ref[...] = (z + b_ref[...]).astype(o_ref.dtype)


def make_fused_params(wq, bq, wo, bo, *, weight_dtype=jnp.float32):
    """Fuse the two Linear layers once, at weight-load time.

    z = (x @ Wq^T + bq) @ Wo^T + bo = x @ (Wq^T @ Wo^T) + (bq @ Wo^T + bo)

    Fusion is performed in f32; W_fused may be downcast last (e.g. to bf16 for
    a bf16 activation path).  The fused bias stays in f32 and is added inside
    the kernel before the output downcast.
    """
    wq_t = wq.T.astype(jnp.float32)                        # (64, 128)
    wo_t = wo.T.astype(jnp.float32)                        # (128, 128)
    w_fused = jnp.dot(wq_t, wo_t).astype(weight_dtype)     # (64, 128)
    b_fused = (jnp.dot(bq.astype(jnp.float32), wo_t)
               + bo.astype(jnp.float32)).reshape(1, OUT_DIM)  # (1, 128) f32
    return w_fused, b_fused


@functools.partial(jax.jit, static_argnames=("tm",))
def my_attention_fused(x, w_fused, b_fused, *, tm=8192):
    """x: (..., 64) f32 or bf16; w_fused: (64,128); b_fused: (1,128) f32."""
    orig_shape = x.shape
    assert orig_shape[-1] == IN_DIM
    x2d = x.reshape(-1, IN_DIM)
    M = x2d.shape[0]

    # Row tiling:
    #  * big default tile (8192 rows) for the HBM-bound stream;
    #  * small M clamps to a single exact block (no padded layout, no masking);
    #  * moderate/large M guarantees >= 2 grid steps so v7x's two TensorCores
    #    both get work on the "parallel" axis.
    if M >= _SPLIT_MIN_ROWS:
        tm_eff = min(tm, _round_up(pl.cdiv(M, 2), 8))
    else:
        tm_eff = min(tm, _round_up(M, 8))
    grid = (pl.cdiv(M, tm_eff),)

    x_bytes = jnp.dtype(x.dtype).itemsize
    w_bytes = jnp.dtype(w_fused.dtype).itemsize
    cost = pl.CostEstimate(
        flops=2 * M * IN_DIM * OUT_DIM,
        transcendentals=0,
        bytes_accessed=(M * IN_DIM * x_bytes          # x in
                        + M * OUT_DIM * x_bytes       # z out
                        + IN_DIM * OUT_DIM * w_bytes  # fused weight
                        + OUT_DIM * 4),               # fused bias (f32)
    )

    out = pl.pallas_call(
        _fused_linear_kernel,
        out_shape=jax.ShapeDtypeStruct((M, OUT_DIM), x.dtype),
        grid_spec=pltpu.PrefetchScalarGridSpec(
            num_scalar_prefetch=0,
            grid=grid,
            in_specs=[
                pl.BlockSpec((tm_eff, IN_DIM), lambda i: (i, 0)),    # x rows
                pl.BlockSpec((IN_DIM, OUT_DIM), lambda i: (0, 0)),   # fused W (resident)
                pl.BlockSpec((1, OUT_DIM), lambda i: (0, 0)),        # fused bias (resident)
            ],
            out_specs=pl.BlockSpec((tm_eff, OUT_DIM), lambda i: (i, 0)),
        ),
        compiler_params=pltpu.CompilerParams(
            dimension_semantics=("parallel",),
            # 2 MiB x-tile + 4 MiB out-tile, double-buffered (~12 MiB) + W:
            # raise above v5e's 16 MiB scoped default, stay well under v7x's
            # 64 MiB physical VMEM.
            vmem_limit_bytes=32 << 20,
        ),
        cost_estimate=cost,
    )(x2d, w_fused, b_fused)

    return out.reshape(*orig_shape[:-1], OUT_DIM)


def my_attention_pallas(x, wq, bq, wo, bo, *, tm=8192):
    """Convenience one-shot wrapper (fuses weights per call; prefer
    make_fused_params + my_attention_fused when weights are reused)."""
    w_fused, b_fused = make_fused_params(wq, bq, wo, bo, weight_dtype=x.dtype)
    return my_attention_fused(x, w_fused, b_fused, tm=tm)


def my_attention_ref(x, wq, bq, wo, bo):
    h = x @ wq.T + bq
    return h @ wo.T + bo


if __name__ == "__main__":
    key = jax.random.PRNGKey(0)
    kx, kwq, kbq, kwo, kbo = jax.random.split(key, 5)

    # Small shapes consistent with the module: batch=2, seq=8, hidden=64.
    x = jax.random.normal(kx, (2, 8, IN_DIM), dtype=jnp.float32)

    # nn.Linear param shapes: weight (out, in), bias (out,).
    wq = jax.random.normal(kwq, (HID_DIM, IN_DIM), dtype=jnp.float32) * 0.05
    bq = jax.random.normal(kbq, (HID_DIM,), dtype=jnp.float32) * 0.05
    wo = jax.random.normal(kwo, (OUT_DIM, HID_DIM), dtype=jnp.float32) * 0.05
    bo = jax.random.normal(kbo, (OUT_DIM,), dtype=jnp.float32) * 0.05

    z_ref = my_attention_ref(x, wq, bq, wo, bo)

    # --- f32 path: fuse once (weight-load time), then run the kernel. ---
    w_fused, b_fused = make_fused_params(wq, bq, wo, bo, weight_dtype=jnp.float32)
    z = my_attention_fused(x, w_fused, b_fused)
    z = jax.block_until_ready(z)
    assert z.shape == (2, 8, OUT_DIM), z.shape
    # Fused weights re-associate the two matmuls; f32 rounding stays well
    # within 1e-4 at these scales.
    assert jnp.allclose(z, z_ref, atol=1e-4, rtol=1e-4), float(jnp.abs(z - z_ref).max())

    # --- bf16 I/O path (HBM-bound op -> ~2x fewer bytes): looser tolerance. ---
    w_fused_bf16, b_fused_f32 = make_fused_params(wq, bq, wo, bo,
                                                  weight_dtype=jnp.bfloat16)
    z_bf16 = my_attention_fused(x.astype(jnp.bfloat16), w_fused_bf16, b_fused_f32)
    z_bf16 = jax.block_until_ready(z_bf16)
    assert z_bf16.shape == (2, 8, OUT_DIM), z_bf16.shape
    assert z_bf16.dtype == jnp.bfloat16
    assert jnp.allclose(z_bf16.astype(jnp.float32), z_ref, atol=5e-2, rtol=5e-2), \
        float(jnp.abs(z_bf16.astype(jnp.float32) - z_ref).max())

    print("KERNEL_OK")
</pallas_src>

<mosaic_0001>
module attributes {stable_mosaic.version = 11 : i64} {
  func.func @_fused_linear_kernel(%arg0: i32, %arg1: memref<16x64xf32, #tpu.memory_space<vmem>>, %arg2: memref<64x128xf32, #tpu.memory_space<vmem>>, %arg3: memref<1x128xf32, #tpu.memory_space<vmem>>, %arg4: memref<16x128xf32, #tpu.memory_space<vmem>>) attributes {dimension_semantics = [#tpu.dimension_semantics<parallel>], iteration_bounds = array<i64: 1>, scalar_prefetch = 0 : i64, scratch_operands = 0 : i64, tpu.core_type = #tpu.core_type<tc>, window_params = [{transform_indices = @transform_0, window_bounds = array<i64: 16, 64>}, {pipeline_mode = #tpu.pipeline_mode<synchronous>, transform_indices = @transform_1, window_bounds = array<i64: 64, 128>}, {pipeline_mode = #tpu.pipeline_mode<synchronous>, transform_indices = @transform_2, window_bounds = array<i64: 1, 128>}, {transform_indices = @transform_3, window_bounds = array<i64: 16, 128>}]} {
    %c0 = arith.constant 0 : index
    %c0_0 = arith.constant 0 : index
    %0 = vector.load %arg1[%c0, %c0_0] : memref<16x64xf32, #tpu.memory_space<vmem>>, vector<16x64xf32>
    %c0_1 = arith.constant 0 : index
    %c0_2 = arith.constant 0 : index
    %1 = vector.load %arg2[%c0_1, %c0_2] : memref<64x128xf32, #tpu.memory_space<vmem>>, vector<64x128xf32>
    %cst = arith.constant dense<0.000000e+00> : vector<16x128xf32>
    %2 = tpu.matmul %0, %1, %cst {dimension_numbers = #tpu.dot_dimension_numbers<[1], [0], [0], [1], [0, 0, 1, 1], [], []>} : vector<16x64xf32>, vector<64x128xf32>, vector<16x128xf32> -> vector<16x128xf32>
    %c0_3 = arith.constant 0 : index
    %c0_4 = arith.constant 0 : index
    %3 = vector.load %arg3[%c0_3, %c0_4] : memref<1x128xf32, #tpu.memory_space<vmem>>, vector<1x128xf32>
    %4 = vector.broadcast %3 : vector<1x128xf32> to vector<16x128xf32>
    %5 = arith.addf %2, %4 : vector<16x128xf32>
    %c0_5 = arith.constant 0 : index
    %c0_6 = arith.constant 0 : index
    %6 = vector.load %arg4[%c0_5, %c0_6] : memref<16x128xf32, #tpu.memory_space<vmem>>, vector<16x128xf32>
    tpu.vector_store %arg4[%c0_5, %c0_6], %5 {strides = array<i32>} : memref<16x128xf32, #tpu.memory_space<vmem>>, vector<16x128xf32>,
    return
  }
  func.func @transform_0(%arg0: i32) -> (i32, i32) {
    %c0_i32 = arith.constant 0 : i32
    %c0_i32_0 = arith.constant 0 : i32
    return %arg0, %c0_i32 : i32, i32
  }
  func.func @transform_1(%arg0: i32) -> (i32, i32) {
    %c0_i32 = arith.constant 0 : i32
    %c0_i32_0 = arith.constant 0 : i32
    %c0_i32_1 = arith.constant 0 : i32
    return %c0_i32, %c0_i32_0 : i32, i32
  }
  func.func @transform_2(%arg0: i32) -> (i32, i32) {
    %c0_i32 = arith.constant 0 : i32
    %c0_i32_0 = arith.constant 0 : i32
    %c0_i32_1 = arith.constant 0 : i32
    return %c0_i32, %c0_i32_0 : i32, i32
  }
  func.func @transform_3(%arg0: i32) -> (i32, i32) {
    %c0_i32 = arith.constant 0 : i32
    %c0_i32_0 = arith.constant 0 : i32
    return %arg0, %c0_i32 : i32, i32
  }
}

</mosaic_0001>

<bundles_post_ra>
// kernel: my_attention_fused.1
= control target key start
LH: loop header
LB: loop body
LE: loop exit
PB: predicated region body
PF: predicated region fallthrough
CT: control target
= control target key end

     0   :  { %8 = vsyncpa [#allocation3], 0  ;;  %s253_s0 = inlined_call_operand.hbm [shape: f32[16,64], index: 0, kind: input, shape index: {}]   ;;  %s254_s1 = inlined_call_operand.hbm [shape: f32[64,128], index: 1, kind: input, shape index: {}]   ;;  %s255_s2 = inlined_call_operand.vmem [shape: f32[1,128], index: 2, kind: input, shape index: {}]   ;;  %s256_s3 = inlined_call_operand.hbm [shape: f32[16,128], index: 3, kind: output, shape index: {}]  }
   0x1   :  { %9 = vsyncpa [#allocation6], 0 }
   0x2   :  { %10 = vsyncpa [#allocation4], 0  ;;  %s15_s14 = sshll.u32 %s253_s0, 4  ;;  %s207_s15 = smov [#allocation2]   ;;  %s16_s14 = int_to_ptr.hbm [resolvable:$true] %s15_s14 }
   0x3   :  { %s17_s16 = sshll.u32 %s207_s15, 4  ;;  %s28_s19 = sshll.u32 %s254_s1, 4  ;;  %s18_s16 = int_to_ptr.vmem [resolvable:$true] %s17_s16  ;;  %s29_s19 = int_to_ptr.hbm [resolvable:$true] %s28_s19 }
   0x4   :  { %s208_s20 = smov 128   ;;  %s209_s21 = smov 8  }
   0x5   :  { %23 = dma.hbm_to_vmem [thread:$0]  %s16_s14, 256, %s18_s16, [#allocation3], %s208_s20, %s208_s20, %s209_s21  }
   0x6   :  { %s210_s22 = smov [#allocation5]  }
   0x7   :  { %s30_s23 = sshll.u32 %s210_s22, 4  ;;  %s31_s23 = int_to_ptr.vmem [resolvable:$true] %s30_s23 }
   0x8   :  { %36 = dma.hbm_to_vmem [thread:$0]  %s29_s19, 1024, %s31_s23, [#allocation6], %s208_s20, %s208_s20, %s209_s21  }
   0x9   :  { %201 = dma.done.wait [#allocation3], 256  }
   0xa   :  { %202 = vsyncadd [#allocation3], 4294967040 }
   0xb   :  { %203 = dma.done.wait [#allocation6], 1024  }
   0xc   :  { %204 = vsyncadd [#allocation6], 4294966272  ;;  %v56_v0 = vld [vmem:[#allocation5 + $0x38] sm:$0xff]  ;;  %v55_v1 = vld [vmem:[#allocation5 + $0x30] sm:$0xff]  ;;  %vm61_vm0 = vcmask 523264   ;;  %s211_s24 = smov [#allocation7]  }
   0xd   :  { %76 = vmatpush.msra.mxu0 %v56_v0  ;;  %115 = vmatpush.msra.mxu1 %v56_v0  ;;  %v54_v2 = vld [vmem:[#allocation5 + $0x28] sm:$0xff]  ;;  %v53_v3 = vld [vmem:[#allocation5 + $0x20] sm:$0xff]  ;;  %v52_v4 = vld [vmem:[#allocation5 + $0x18] sm:$0xff]  ;;  %s97_s25 = sshll.u32 %s211_s24, 4  ;;  %s99_s28 = sshll.u32 %s256_s3, 4  ;;  %s98_s25 = int_to_ptr.vmem [resolvable:$true] %s97_s25  ;;  %s100_s28 = int_to_ptr.hbm [resolvable:$true] %s99_s28 }
   0xe   :  { %v51_v5 = vld [vmem:[#allocation5 + $0x10] sm:$0xff]  ;;  %v50_v6 = vld [vmem:[#allocation5 + $0x8] sm:$0xff]  ;;  %v49_v7 = vld [vmem:[#allocation5] sm:$0xff] }
   0xf   :  { %77 = vmatpush.msra.mxu0 %v55_v1  ;;  %116 = vmatpush.msra.mxu1 %v55_v1  ;;  %v47_v8 = vld [vmem:[#allocation2] sm:$0xff]  ;;  %v48_v9 = vld [vmem:[#allocation2 + $0x8] sm:$0xff] }
  0x10   :  { %v128_v10 = vld [vmem:[%s255_s2] ss:$0 sm:$0xff] }
  0x11   :  { %78 = vmatpush.msra.mxu0 %v54_v2  ;;  %117 = vmatpush.msra.mxu1 %v54_v2 }
  0x13   :  { %79 = vmatpush.msra.mxu0 %v53_v3  ;;  %118 = vmatpush.msra.mxu1 %v53_v3 }
  0x15   :  { %80 = vmatpush.msra.mxu0 %v52_v4  ;;  %119 = vmatpush.msra.mxu1 %v52_v4 }
  0x17   :  { %81 = vmatpush.msra.mxu0 %v51_v5  ;;  %120 = vmatpush.msra.mxu1 %v51_v5 }
  0x19   :  { %82 = vmatpush.msra.mxu0 %v50_v6  ;;  %121 = vmatpush.msra.mxu1 %v50_v6 }
  0x1b   :  { %83 = vmatpush.msra.mxu0 %v49_v7  ;;  %122 = vmatpush.msra.mxu1 %v49_v7 }
  0x1c   :  { %113 = vmatmul.msk.f32.vlgmr.msra.gmra.mxu0 %vm61_vm0, %v47_v8  ;;  %114 = vmatmul.msk.f32.vlgmr.msra.gmra.mxu1 %vm61_vm0, %v48_v9 }
  0x99   :  { %v85_v11 = vpop.f32.mrf.mxu0  ;;  %v88_v12 = vpop.f32.mrf.mxu1 }
  0x9a   :  { %v86_v13 = vadd.f32 %v128_v10, %v85_v11  ;;  %v89_v14 = vadd.f32 %v128_v10, %v88_v12 }
  0x9c   :  { %91 = vst [vmem:[#allocation7] sm:$0xff] %v86_v13 }
  0x9d   :  { %92 = vst [vmem:[#allocation7 + $0x8] sm:$0xff] %v89_v14 }
  0x9e   :  { %105 = dma.vmem_to_hbm [thread:$0]  %s98_s25, 256, %s100_s28, [#allocation4], %s208_s20, %s208_s20, %s209_s21  }
  0x9f   :  { %205 = dma.done.wait [#allocation4], 256  }
  0xa0   :  { %206 = vsyncadd [#allocation4], 4294967040 }
  0xa1   :  { %110 = vsyncpa [#allocation3], 1 }
  0xa2   :  { %111 = vsyncpa [#allocation6], 1 }
  0xa3   :  { %112 = vsyncpa [#allocation4], 1 }

</bundles_post_ra>
